<compile_context>
chip_gen: v7x
topology: tpu7x:2x2x1
jax: 0.10.0
libtpu: 0.0.40
codegen_flags: <defaults>
</compile_context>

<pallas_src>
import functools
import math

import jax
import jax.numpy as jnp
from jax import lax
from jax.experimental import pallas as pl
from jax.experimental.pallas import tpu as pltpu

BN_EPS = 1e-5
EXPANSION = 4          # torchvision Bottleneck expansion
NUM_CLASSES = 20       # module hard-codes self.num_classes = 20
COUT_PAD = 128         # lane-dense padding for the 20-class heads
VMEM_LIMIT_BYTES = 48 * 1024 * 1024   # explicit scoped-VMEM budget (v7x has 64 MiB/TC)


# ---------------------------------------------------------------------------
# tiling helpers
# ---------------------------------------------------------------------------
def _round_up(x, m):
    return (x + m - 1) // m * m


def _pick_tile(dim, cap, mult):
    """Largest tile <= cap that is either the full dim (full-extent blocks are always
    legal) or a divisor of dim that is a multiple of `mult`.  None -> caller pads."""
    if dim <= cap:
        return dim
    t = (cap // mult) * mult
    while t >= mult:
        if dim % t == 0:
            return t
        t -= mult
    return None


def _pick_row_block(Ho, Wp, cin, tn, n_batch, n_ctiles):
    """Output-row block (th) for the direct 3x3 conv: largest divisor of Ho whose
    window fits a ~10 MiB VMEM budget and <= 2048 output rows, then shrunk (next
    smaller divisor) until the grid has >= 4 parallel blocks for the megacore."""
    budget = 10 * 1024 * 1024
    rows_cap = 2048

    def vmem_est(th):
        rin = (th + 3) * Wp
        rout = th * Wp
        return (2 * rin * cin * 2          # double-buffered input block (bf16)
                + 2 * rout * tn * 2        # double-buffered output block (bf16)
                + rout * 9 * cin * 2       # in-kernel im2col concat temp (bf16)
                + rout * tn * 4            # f32 dot result
                + 2 * 9 * cin * tn * 2)    # weight block (bf16)

    divs = [d for d in range(1, Ho + 1) if Ho % d == 0]
    ok = [d for d in divs if vmem_est(d) <= budget and d * Wp <= max(rows_cap, Wp)]
    if not ok:
        ok = [1]
    idx = len(ok) - 1
    th = ok[idx]
    while n_batch * (Ho // th) * n_ctiles < 4 and idx > 0:
        idx -= 1
        th = ok[idx]
    return th


# ---------------------------------------------------------------------------
# fused matmul kernels:  act((A @ B) + shift [+ residual])
# (BN scale is pre-folded into B's columns at parameter-prep time.)
# ---------------------------------------------------------------------------
def _mm_kernel_k1(*refs, act, has_res):
    """Single K step: no accumulator scratch, direct compute + store."""
    if has_res:
        a_ref, b_ref, sh_ref, r_ref, o_ref = refs
    else:
        a_ref, b_ref, sh_ref, o_ref = refs
        r_ref = None
    y = jnp.dot(a_ref[...], b_ref[...], preferred_element_type=jnp.float32)
    y = y + sh_ref[...]
    if r_ref is not None:
        y = y + r_ref[...].astype(jnp.float32)
    if act == "relu":
        y = jnp.maximum(y, 0.0)
    elif act == "sigmoid":
        y = jax.nn.sigmoid(y)
    o_ref[...] = y.astype(o_ref.dtype)


def _mm_kernel_acc(*refs, act, has_res):
    """Multi K step: f32 VMEM accumulator across the reduction grid axis."""
    if has_res:
        a_ref, b_ref, sh_ref, r_ref, o_ref, acc_ref = refs
    else:
        a_ref, b_ref, sh_ref, o_ref, acc_ref = refs
        r_ref = None

    k = pl.program_id(2)

    @pl.when(k == 0)
    def _():
        acc_ref[...] = jnp.zeros_like(acc_ref)

    acc_ref[...] += jnp.dot(a_ref[...], b_ref[...],
                            preferred_element_type=jnp.float32)

    @pl.when(k == pl.num_programs(2) - 1)
    def _():
        y = acc_ref[...] + sh_ref[...]
        if r_ref is not None:
            y = y + r_ref[...].astype(jnp.float32)
        if act == "relu":
            y = jnp.maximum(y, 0.0)
        elif act == "sigmoid":
            y = jax.nn.sigmoid(y)
        o_ref[...] = y.astype(o_ref.dtype)


def matmul_fused(a, b, shift, *, act="none", residual=None, out_dtype=jnp.bfloat16):
    """a:(M,K) bf16, b:(K,N) bf16 (BN scale folded in), shift:(1,N) f32,
    residual:(M,N) bf16."""
    M, K = a.shape
    K2, N = b.shape
    assert K == K2

    tk = _pick_tile(K, cap=2048, mult=128)
    tn = _pick_tile(N, cap=256, mult=128)
    assert tk is not None and tn is not None, (K, N)

    tm = _pick_tile(M, cap=512, mult=16)
    Mp = M
    if tm is None:                                   # rare fallback: pad M
        tm = 256
        Mp = _round_up(M, tm)
        a = jnp.pad(a, ((0, Mp - M), (0, 0)))
        if residual is not None:
            residual = jnp.pad(residual, ((0, Mp - M), (0, 0)))

    has_res = residual is not None
    nk = K // tk
    single_k = nk == 1

    inputs = [a.astype(jnp.bfloat16), b, shift]
    if single_k:
        in_specs = [
            pl.BlockSpec((tm, tk), lambda i, j: (i, 0)),
            pl.BlockSpec((tk, tn), lambda i, j: (0, j)),
            pl.BlockSpec((1, tn), lambda i, j: (0, j)),
        ]
        if has_res:
            inputs.append(residual.astype(jnp.bfloat16))
            in_specs.append(pl.BlockSpec((tm, tn), lambda i, j: (i, j)))
        grid = (Mp // tm, N // tn)
        out_spec = pl.BlockSpec((tm, tn), lambda i, j: (i, j))
        kernel = functools.partial(_mm_kernel_k1, act=act, has_res=has_res)
        scratch = []
        sem = ("parallel", "parallel")
    else:
        in_specs = [
            pl.BlockSpec((tm, tk), lambda i, j, k: (i, k)),
            pl.BlockSpec((tk, tn), lambda i, j, k: (k, j)),
            pl.BlockSpec((1, tn), lambda i, j, k: (0, j)),
        ]
        if has_res:
            inputs.append(residual.astype(jnp.bfloat16))
            in_specs.append(pl.BlockSpec((tm, tn), lambda i, j, k: (i, j)))
        grid = (Mp // tm, N // tn, nk)
        out_spec = pl.BlockSpec((tm, tn), lambda i, j, k: (i, j))
        kernel = functools.partial(_mm_kernel_acc, act=act, has_res=has_res)
        scratch = [pltpu.VMEM((tm, tn), jnp.float32)]
        sem = ("parallel", "parallel", "arbitrary")

    cost = pl.CostEstimate(
        flops=2 * Mp * K * N,
        transcendentals=Mp * N if act == "sigmoid" else 0,
        bytes_accessed=(Mp * K * (N // tn) + K * N * (Mp // tm)
                        + Mp * N * (2 if has_res else 1)) * 2 + N * 4)

    out = pl.pallas_call(
        kernel,
        out_shape=jax.ShapeDtypeStruct((Mp, N), out_dtype),
        grid_spec=pltpu.PrefetchScalarGridSpec(
            num_scalar_prefetch=0,
            grid=grid,
            in_specs=in_specs,
            out_specs=out_spec,
            scratch_shapes=scratch,
        ),
        compiler_params=pltpu.CompilerParams(
            dimension_semantics=sem,
            vmem_limit_bytes=VMEM_LIMIT_BYTES),
        cost_estimate=cost,
    )(*inputs)
    return out[:M] if Mp != M else out


# ---------------------------------------------------------------------------
# direct stride-1 3x3 conv kernel: VMEM-local im2col (K = 9*Cin) per row-block
# ---------------------------------------------------------------------------
def _dconv_kernel(x_ref, w_ref, sh_ref, o_ref, *, offsets, rout, act):
    # Build the im2col block in VMEM: each tap is a contiguous row-window of the
    # flattened padded image; concatenating along channels deepens the contraction
    # to K = 9*Cin so a single MXU dot replaces nine shallow K=Cin dots.
    cols = jnp.concatenate([x_ref[0, pl.ds(off, rout), :] for off in offsets], axis=-1)
    y = jnp.dot(cols, w_ref[...], preferred_element_type=jnp.float32)
    y = y + sh_ref[...]
    if act == "relu":
        y = jnp.maximum(y, 0.0)
    elif act == "sigmoid":
        y = jax.nn.sigmoid(y)
    o_ref[...] = y[None].astype(o_ref.dtype)


def conv3x3_s1_bn_act(x, w_cols, shift, *, act):
    """Stride-1 3x3 conv (pad=1) + folded-BN shift + activation.
    x:(N,H,W,Cin) bf16; w_cols:(9*Cin, Cout) bf16 in (dy,dx,cin) row-major order
    (BN scale folded in); shift:(1, Cout) f32."""
    N, H, W, Cin = x.shape
    KC, Cout = w_cols.shape
    assert KC == 9 * Cin
    pad = 1
    Ho, Wo = H, W
    Wp = W + 2 * pad

    tn = _pick_tile(Cout, cap=256, mult=128)
    assert tn is not None, Cout
    n_ctiles = Cout // tn
    th = _pick_row_block(Ho, Wp, Cin, tn, N, n_ctiles)
    nb = Ho // th
    rows_in = (th + 3) * Wp          # th output rows + 2 halo rows + 1 safety row
    rout = th * Wp

    # one extra padded bottom row keeps every tap's contiguous row window in bounds
    # TODO(synk): the producing 1x1 conv could write directly into this padded layout
    # to avoid this pad (and, for nb>1, halo-duplication) HBM round-trip.
    xp = jnp.pad(x, ((0, 0), (pad, pad + 1), (pad, pad), (0, 0)))   # (N, H+3, Wp, Cin)
    if nb == 1:
        xw = xp.reshape(N, rows_in, Cin)
    else:
        wins = [xp[:, i * th:i * th + th + 3] for i in range(nb)]
        xw = jnp.stack(wins, axis=1).reshape(N * nb, rows_in, Cin)

    offsets = tuple(dy * Wp + dx for dy in range(3) for dx in range(3))

    cost = pl.CostEstimate(
        flops=2 * N * nb * rout * 9 * Cin * Cout,
        transcendentals=N * nb * rout * Cout if act == "sigmoid" else 0,
        bytes_accessed=(N * nb * rows_in * Cin + 9 * Cin * Cout
                        + N * nb * rout * Cout) * 2)

    out = pl.pallas_call(
        functools.partial(_dconv_kernel, offsets=offsets, rout=rout, act=act),
        out_shape=jax.ShapeDtypeStruct((N * nb, rout, Cout), jnp.bfloat16),
        grid_spec=pltpu.PrefetchScalarGridSpec(
            num_scalar_prefetch=0,
            grid=(N * nb, n_ctiles),
            in_specs=[
                pl.BlockSpec((1, rows_in, Cin), lambda m, j: (m, 0, 0)),
                pl.BlockSpec((9 * Cin, tn), lambda m, j: (0, j)),
                pl.BlockSpec((1, tn), lambda m, j: (0, j)),
            ],
            out_specs=pl.BlockSpec((1, rout, tn), lambda m, j: (m, 0, j)),
        ),
        compiler_params=pltpu.CompilerParams(
            dimension_semantics=("parallel", "parallel"),
            vmem_limit_bytes=VMEM_LIMIT_BYTES),
        cost_estimate=cost,
    )(xw, w_cols, shift)
    # drop the W-padding "junk" columns
    return out.reshape(N, nb * th, Wp, Cout)[:, :, :Wo, :]


# ---------------------------------------------------------------------------
# conv wrappers
# ---------------------------------------------------------------------------
def conv1x1_bn_act(x, w, shift, *, stride=1, act="none", residual=None):
    if stride != 1:
        x = x[:, ::stride, ::stride, :]
    N, H, W, Cin = x.shape
    Cout = w.shape[1]
    res = residual.reshape(N * H * W, Cout) if residual is not None else None
    y = matmul_fused(x.reshape(N * H * W, Cin), w, shift, act=act, residual=res)
    return y.reshape(N, H, W, Cout)


def _im2col(x, kh, kw, stride, pad):
    N, H, W, C = x.shape
    Ho = (H + 2 * pad - kh) // stride + 1
    Wo = (W + 2 * pad - kw) // stride + 1
    if pad:
        x = jnp.pad(x, ((0, 0), (pad, pad), (pad, pad), (0, 0)))
    cols = []
    for dy in range(kh):
        for dx in range(kw):
            cols.append(x[:, dy:dy + stride * Ho:stride, dx:dx + stride * Wo:stride, :])
    cols = jnp.concatenate(cols, axis=-1)
    return cols.reshape(N * Ho * Wo, kh * kw * C), (N, Ho, Wo)


def conv3x3_s2_bn_act(x, w_cols, shift, *, act):
    # TODO(synk): the two stride-2 3x3 convs still use an XLA-side im2col (9x
    # re-materialization of a small map); stride-1 3x3s use the direct kernel above.
    Cout = w_cols.shape[1]
    cols, (N, Ho, Wo) = _im2col(x, 3, 3, 2, 1)
    y = matmul_fused(cols, w_cols, shift, act=act)
    return y.reshape(N, Ho, Wo, Cout)


def stem_conv_bn_relu(x, w, shift):
    # 7x7 stride-2 stem via XLA conv (avoids a 49x im2col blowup); BN scale folded
    # into w, shift added here.
    y = lax.conv_general_dilated(
        x, w, window_strides=(2, 2), padding=((3, 3), (3, 3)),
        dimension_numbers=("NHWC", "HWIO", "NHWC"),
        preferred_element_type=jnp.float32)
    y = jnp.maximum(y + shift, 0.0)
    return y.astype(jnp.bfloat16)


def maxpool_3x3_s2_p1(x):
    neg = jnp.array(-jnp.inf, dtype=x.dtype)
    return lax.reduce_window(x, neg, lax.max,
                             window_dimensions=(1, 3, 3, 1),
                             window_strides=(1, 2, 2, 1),
                             padding=((0, 0), (1, 1), (1, 1), (0, 0)))


# ---------------------------------------------------------------------------
# Parameters (xavier-uniform like the module's init), packed kernel-ready with
# the eval-mode BN scale folded into the weight columns.
# ---------------------------------------------------------------------------
def _xavier(key, shape):
    kh, kw, cin, cout = shape
    fan_in = cin * kh * kw
    fan_out = cout * kh * kw
    limit = math.sqrt(6.0 / (fan_in + fan_out))
    return jax.random.uniform(key, shape, jnp.float32, -limit, limit)


def _bn_scale_shift(c):
    # eval-mode BatchNorm with gamma=1, beta=0, running_mean=0, running_var=1
    scale = jnp.full((c,), 1.0 / math.sqrt(1.0 + BN_EPS), jnp.float32)
    shift = jnp.zeros((1, c), jnp.float32)
    return scale, shift


def _prep_1x1(key, cin, cout, scale=None, cout_pad=None):
    w = _xavier(key, (1, 1, cin, cout)).reshape(cin, cout)
    if scale is not None:
        w = w * scale[None, :]
    cp = cout if cout_pad is None else cout_pad
    if cp != cout:
        w = jnp.pad(w, ((0, 0), (0, cp - cout)))
    return w.astype(jnp.bfloat16)


def _prep_3x3_cols(key, cin, cout, scale=None, cout_pad=None):
    w = _xavier(key, (3, 3, cin, cout))
    if scale is not None:
        w = w * scale[None, None, None, :]
    w = w.reshape(9 * cin, cout)
    cp = cout if cout_pad is None else cout_pad
    if cp != cout:
        w = jnp.pad(w, ((0, 0), (0, cp - cout)))
    return w.astype(jnp.bfloat16)


def make_bottleneck_params(key, inplanes, planes, stride):
    k = jax.random.split(key, 4)
    s1, b1 = _bn_scale_shift(planes)
    s2, b2 = _bn_scale_shift(planes)
    s3, b3 = _bn_scale_shift(planes * EXPANSION)
    p = {
        "w1": _prep_1x1(k[0], inplanes, planes, scale=s1), "b1": b1,
        "w2": _prep_3x3_cols(k[1], planes, planes, scale=s2), "b2": b2,
        "w3": _prep_1x1(k[2], planes, planes * EXPANSION, scale=s3), "b3": b3,
        "stride": stride,
    }
    if stride != 1 or inplanes != planes * EXPANSION:
        sd, bd = _bn_scale_shift(planes * EXPANSION)
        p["wd"] = _prep_1x1(k[3], inplanes, planes * EXPANSION, scale=sd)
        p["bd"] = bd
    return p


def make_resnetcam_params(key, layers=(1, 1, 1, 1)):
    keys = jax.random.split(key, 8)
    bn1_scale, bn1_shift = _bn_scale_shift(64)
    conv1 = _xavier(keys[0], (7, 7, 3, 64)) * bn1_scale[None, None, None, :]
    params = {
        "conv1": conv1.astype(jnp.bfloat16),
        "bn1_shift": bn1_shift.reshape(64),
    }
    inplanes = 64
    planes_list = (64, 128, 256, 512)
    strides = (1, 2, 2, 1)           # stride_l3 computed but unused in the torch module
    blocks = []
    for li, (planes, nb, st) in enumerate(zip(planes_list, layers, strides)):
        sub = jax.random.split(keys[1 + li], nb)
        layer_blocks = []
        for bi in range(nb):
            s = st if bi == 0 else 1
            layer_blocks.append(make_bottleneck_params(sub[bi], inplanes, planes, s))
            inplanes = planes * EXPANSION
        blocks.append(layer_blocks)
    params["layers"] = blocks
    params["cls_w"] = _prep_1x1(keys[5], 2048, NUM_CLASSES, cout_pad=COUT_PAD)
    params["cls_b"] = jnp.zeros((1, COUT_PAD), jnp.float32)
    params["loc_w"] = _prep_3x3_cols(keys[6], 1024, NUM_CLASSES, cout_pad=COUT_PAD)
    params["loc_b"] = jnp.zeros((1, COUT_PAD), jnp.float32)
    return params


# ---------------------------------------------------------------------------
# Forward pass (label=None branch)
# ---------------------------------------------------------------------------
def bottleneck_forward(x, p):
    out = conv1x1_bn_act(x, p["w1"], p["b1"], act="relu")
    if p["stride"] == 1:
        out = conv3x3_s1_bn_act(out, p["w2"], p["b2"], act="relu")
    else:
        out = conv3x3_s2_bn_act(out, p["w2"], p["b2"], act="relu")
    if "wd" in p:
        identity = conv1x1_bn_act(x, p["wd"], p["bd"], stride=p["stride"], act="none")
    else:
        identity = x
    # fused: bn3(conv3(out)) + identity -> relu
    return conv1x1_bn_act(out, p["w3"], p["b3"], act="relu", residual=identity)


def resnetcam_forward(params, x_nchw):
    """label=None branch.  Torch keeps score_1 as self.score_1 and returns
    M = M[0] + M[1].flip(-1); we return (M, score_1)."""
    x = jnp.transpose(x_nchw, (0, 2, 3, 1)).astype(jnp.bfloat16)   # NCHW -> NHWC
    x = stem_conv_bn_relu(x, params["conv1"], params["bn1_shift"])
    x = maxpool_3x3_s2_p1(x)

    for layer in params["layers"][:3]:
        for blk in layer:
            x = bottleneck_forward(x, blk)
    x_3 = x                                                        # layer3 output
    for blk in params["layers"][3]:
        x = bottleneck_forward(x, blk)

    # classifier_cls (1x1 conv, no bias) -> feature map; score_1 = global avg pool
    # (small reduction done in XLA per perf review; no standalone Pallas GAP call)
    feat = conv1x1_bn_act(x, params["cls_w"], params["cls_b"], act="none")
    score_1 = jnp.mean(feat.astype(jnp.float32), axis=(1, 2))[:, :NUM_CLASSES]

    # classifier_loc: 3x3 conv (pad 1, no bias) + sigmoid on layer3 output
    M = conv3x3_s1_bn_act(x_3, params["loc_w"], params["loc_b"], act="sigmoid")
    M = M[..., :NUM_CLASSES].astype(jnp.float32)                   # (N, H, W, 20)

    # label == None:  M = M[0] + M[1].flip(-1)   (assumes batch = [image, flipped image])
    M_out = M[0] + M[1, :, ::-1, :]                                # (H, W, 20)
    M_out = jnp.transpose(M_out, (2, 0, 1))                        # -> (20, H, W)
    return M_out, score_1


if __name__ == "__main__":
    key = jax.random.PRNGKey(0)
    pkey, xkey = jax.random.split(key)
    # small config: Bottleneck blocks, layers=[1,1,1,1], 64x64 input, batch 2
    params = make_resnetcam_params(pkey, layers=(1, 1, 1, 1))
    x = jax.random.normal(xkey, (2, 3, 64, 64), jnp.float32)       # NCHW like PyTorch
    M, score_1 = resnetcam_forward(params, x)
    jax.block_until_ready((M, score_1))
    assert M.shape == (NUM_CLASSES, 4, 4), M.shape
    assert score_1.shape == (2, NUM_CLASSES), score_1.shape
    print("KERNEL_OK")
</pallas_src>

<mosaic_0001>
module attributes {stable_mosaic.version = 11 : i64} {
  func.func @_mm_kernel_k1(%arg0: i32, %arg1: i32, %arg2: memref<512x64xbf16, #tpu.memory_space<vmem>>, %arg3: memref<64x64xbf16, #tpu.memory_space<vmem>>, %arg4: memref<1x64xf32, #tpu.memory_space<vmem>>, %arg5: memref<512x64xbf16, #tpu.memory_space<vmem>>) attributes {dimension_semantics = [#tpu.dimension_semantics<parallel>, #tpu.dimension_semantics<parallel>], iteration_bounds = array<i64: 1, 1>, scalar_prefetch = 0 : i64, scratch_operands = 0 : i64, tpu.core_type = #tpu.core_type<tc>, window_params = [{transform_indices = @transform_0, window_bounds = array<i64: 512, 64>}, {transform_indices = @transform_1, window_bounds = array<i64: 64, 64>}, {transform_indices = @transform_2, window_bounds = array<i64: 1, 64>}, {transform_indices = @transform_3, window_bounds = array<i64: 512, 64>}]} {
    %c0 = arith.constant 0 : index
    %c0_0 = arith.constant 0 : index
    %0 = vector.load %arg2[%c0, %c0_0] : memref<512x64xbf16, #tpu.memory_space<vmem>>, vector<512x64xbf16>
    %c0_1 = arith.constant 0 : index
    %c0_2 = arith.constant 0 : index
    %1 = vector.load %arg3[%c0_1, %c0_2] : memref<64x64xbf16, #tpu.memory_space<vmem>>, vector<64x64xbf16>
    %cst = arith.constant dense<0.000000e+00> : vector<512x64xf32>
    %2 = tpu.matmul %0, %1, %cst {dimension_numbers = #tpu.dot_dimension_numbers<[1], [0], [0], [1], [0, 0, 1, 1], [], []>} : vector<512x64xbf16>, vector<64x64xbf16>, vector<512x64xf32> -> vector<512x64xf32>
    %c0_3 = arith.constant 0 : index
    %c0_4 = arith.constant 0 : index
    %3 = vector.load %arg4[%c0_3, %c0_4] : memref<1x64xf32, #tpu.memory_space<vmem>>, vector<1x64xf32>
    %4 = vector.broadcast %3 : vector<1x64xf32> to vector<512x64xf32>
    %5 = arith.addf %2, %4 : vector<512x64xf32>
    %cst_5 = arith.constant 0.000000e+00 : f32
    %6 = vector.broadcast %cst_5 : f32 to vector<512x64xf32>
    %7 = arith.maximumf %5, %6 : vector<512x64xf32>
    %8 = arith.truncf %7 : vector<512x64xf32> to vector<512x64xbf16>
    %c0_6 = arith.constant 0 : index
    %c0_7 = arith.constant 0 : index
    %9 = vector.load %arg5[%c0_6, %c0_7] : memref<512x64xbf16, #tpu.memory_space<vmem>>, vector<512x64xbf16>
    tpu.vector_store %arg5[%c0_6, %c0_7], %8 {strides = array<i32>} : memref<512x64xbf16, #tpu.memory_space<vmem>>, vector<512x64xbf16>,
    return
  }
  func.func @transform_0(%arg0: i32, %arg1: i32) -> (i32, i32) {
    %c0_i32 = arith.constant 0 : i32
    %c0_i32_0 = arith.constant 0 : i32
    return %arg0, %c0_i32 : i32, i32
  }
  func.func @transform_1(%arg0: i32, %arg1: i32) -> (i32, i32) {
    %c0_i32 = arith.constant 0 : i32
    %c0_i32_0 = arith.constant 0 : i32
    return %c0_i32, %arg1 : i32, i32
  }
  func.func @transform_2(%arg0: i32, %arg1: i32) -> (i32, i32) {
    %c0_i32 = arith.constant 0 : i32
    %c0_i32_0 = arith.constant 0 : i32
    return %c0_i32, %arg1 : i32, i32
  }
  func.func @transform_3(%arg0: i32, %arg1: i32) -> (i32, i32) {
    %c0_i32 = arith.constant 0 : i32
    return %arg0, %arg1 : i32, i32
  }
}

</mosaic_0001>

<bundles_post_ra>
// kernel: tpu_custom_call.1
= control target key start
LH: loop header
LB: loop body
LE: loop exit
PB: predicated region body
PF: predicated region fallthrough
CT: control target
= control target key end

     0   :  { %vm278_vm0 = vcmask 523264   ;;  %vm984_vm1 = vcmask 519168   ;;  %s1887_s1 = inlined_call_operand.vmem [shape: bf16[64,64], index: 1, kind: input, shape index: {}]   ;;  %s1888_s0 = inlined_call_operand.vmem [shape: bf16[512,64], index: 0, kind: input, shape index: {}]   ;;  %s1889_s2 = inlined_call_operand.vmem [shape: f32[1,64], index: 2, kind: input, shape index: {}]   ;;  %s1890_s3 = inlined_call_operand.vmem [shape: bf16[512,64], index: 3, kind: output, shape index: {}]  }
   0x1   :  { %v1366_v0 = vld [vmem:[%s1887_s1] sm:$0xff]   ;;  %v1367_v1 = vld [vmem:[%s1887_s1 + $0x8] sm:$0xff]   ;;  %v1368_v2 = vld [vmem:[%s1887_s1 + $0x10] sm:$0xff]  }
   0x2   :  { %1286 = vmatprep.subr.bf16.mxu0 %v1366_v0  ;;  %1358 = vmatprep.subr.bf16.mxu1 %v1366_v0  ;;  %v1370_v3 = vld [vmem:[%s1888_s0] sm:$0xff]   ;;  %v1369_v5 = vld [vmem:[%s1887_s1 + $0x18] sm:$0xff]   ;;  %v1372_v6 = vld [vmem:[%s1888_s0 + $0x8] sm:$0xff]  }
   0x3   :  { %1287 = vmatpush3.bf16.msra.mxu0 %v1366_v0  ;;  %1362 = vmatpush3.bf16.msra.mxu1 %v1366_v0  ;;  %v1371_v4 = vld [vmem:[%s1888_s0 + $0x80] sm:$0xff]   ;;  %v1373_v7 = vld [vmem:[%s1888_s0 + $0x88] sm:$0xff]   ;;  %v1374_v8 = vld [vmem:[%s1888_s0 + $0x10] sm:$0xff]  }
   0x4   :  { %1288 = vmatprep.subr.bf16.mxu0 %v1367_v1  ;;  %1359 = vmatprep.subr.bf16.mxu1 %v1367_v1  ;;  %v1375_v9 = vld [vmem:[%s1888_s0 + $0x90] sm:$0xff]   ;;  %v1376_v10 = vld [vmem:[%s1888_s0 + $0x18] sm:$0xff]   ;;  %v1378_v12 = vld [vmem:[%s1888_s0 + $0x20] sm:$0xff]  }
   0x5   :  { %1294 = vmatprep.mubr.msk.bf16.mxu0 %vm278_vm0, %v1370_v3  ;;  %1326 = vmatprep.mubr.msk.bf16.mxu1 %vm278_vm0, %v1371_v4  ;;  %v1377_v11 = vld [vmem:[%s1888_s0 + $0x98] sm:$0xff]   ;;  %v1379_v13 = vld [vmem:[%s1888_s0 + $0xa0] sm:$0xff]   ;;  %v1380_v14 = vld [vmem:[%s1888_s0 + $0x28] sm:$0xff]  }
   0x6   :  { %v1381_v15 = vld [vmem:[%s1888_s0 + $0xa8] sm:$0xff]   ;;  %v1382_v16 = vld [vmem:[%s1888_s0 + $0x30] sm:$0xff]   ;;  %v1384_v18 = vld [vmem:[%s1888_s0 + $0x38] sm:$0xff]  }
   0x7   :  { %1289 = vmatpush3.bf16.msra.mxu0 %v1367_v1  ;;  %1363 = vmatpush3.bf16.msra.mxu1 %v1367_v1  ;;  %v1383_v17 = vld [vmem:[%s1888_s0 + $0xb0] sm:$0xff]   ;;  %v1385_v19 = vld [vmem:[%s1888_s0 + $0xb8] sm:$0xff]   ;;  %v1386_v20 = vld [vmem:[%s1888_s0 + $0x40] sm:$0xff]  }
   0x8   :  { %1290 = vmatprep.subr.bf16.mxu0 %v1368_v2  ;;  %1360 = vmatprep.subr.bf16.mxu1 %v1368_v2  ;;  %v1387_v21 = vld [vmem:[%s1888_s0 + $0xc0] sm:$0xff]   ;;  %v1388_v22 = vld [vmem:[%s1888_s0 + $0x48] sm:$0xff]   ;;  %v1390_v24 = vld [vmem:[%s1888_s0 + $0x50] sm:$0xff]  }
   0x9   :  { %v1389_v23 = vld [vmem:[%s1888_s0 + $0xc8] sm:$0xff]   ;;  %v1391_v25 = vld [vmem:[%s1888_s0 + $0xd0] sm:$0xff]   ;;  %v1392_v26 = vld [vmem:[%s1888_s0 + $0x58] sm:$0xff]  }
   0xa   :  { %v1393_v27 = vld [vmem:[%s1888_s0 + $0xd8] sm:$0xff]   ;;  %v1394_v28 = vld [vmem:[%s1888_s0 + $0x60] sm:$0xff]   ;;  %v1396_v30 = vld [vmem:[%s1888_s0 + $0x68] sm:$0xff]  }
   0xb   :  { %1291 = vmatpush3.bf16.msra.mxu0 %v1368_v2  ;;  %1364 = vmatpush3.bf16.msra.mxu1 %v1368_v2  ;;  %v1395_v29 = vld [vmem:[%s1888_s0 + $0xe0] sm:$0xff]   ;;  %v1397_v31 = vld [vmem:[%s1888_s0 + $0xe8] sm:$0xff]   ;;  %v1398_v32 = vld [vmem:[%s1888_s0 + $0x70] sm:$0xff]  }
   0xc   :  { %1292 = vmatprep.subr.bf16.mxu0 %v1369_v5  ;;  %1361 = vmatprep.subr.bf16.mxu1 %v1369_v5  ;;  %v1399_v33 = vld [vmem:[%s1888_s0 + $0xf0] sm:$0xff]   ;;  %v1400_v34 = vld [vmem:[%s1888_s0 + $0x78] sm:$0xff]   ;;  %v1565_v36 = vld [vmem:[%s1889_s2] ss:$0 sm:$0xff] }
   0xd   :  { %v1401_v35 = vld [vmem:[%s1888_s0 + $0xf8] sm:$0xff]  }
   0xf   :  { %1293 = vmatpush3.bf16.msra.mxu0 %v1369_v5  ;;  %1365 = vmatpush3.bf16.msra.mxu1 %v1369_v5 }
  0x12   :  { %1295 = vmatmul.mubr.msk.bf16.vlgmr.msra.gmra.mrb[0].mxu0 %vm278_vm0, %v1372_v6  ;;  %1327 = vmatmul.mubr.msk.bf16.vlgmr.msra.gmra.mrb[0].mxu1 %vm278_vm0, %v1373_v7 }
  0x13   :  { %1298 = vmatprep.mubr.msk.bf16.mxu0 %vm278_vm0, %v1374_v8  ;;  %1330 = vmatprep.mubr.msk.bf16.mxu1 %vm278_vm0, %v1375_v9 }
  0x1a   :  { %1299 = vmatmul.mubr.msk.bf16.gmra.mrb[4].mxu0 %vm278_vm0, %v1376_v10  ;;  %1331 = vmatmul.mubr.msk.bf16.gmra.mrb[4].mxu1 %vm278_vm0, %v1377_v11 }
  0x1b   :  { %1302 = vmatprep.mubr.msk.bf16.mxu0 %vm278_vm0, %v1378_v12  ;;  %1334 = vmatprep.mubr.msk.bf16.mxu1 %vm278_vm0, %v1379_v13 }
  0x22   :  { %1303 = vmatmul.mubr.msk.bf16.gmra.mrb[8].mxu0 %vm278_vm0, %v1380_v14  ;;  %1335 = vmatmul.mubr.msk.bf16.gmra.mrb[8].mxu1 %vm278_vm0, %v1381_v15 }
  0x23   :  { %1306 = vmatprep.mubr.msk.bf16.mxu0 %vm278_vm0, %v1382_v16  ;;  %1338 = vmatprep.mubr.msk.bf16.mxu1 %vm278_vm0, %v1383_v17 }
  0x2a   :  { %1307 = vmatmul.mubr.msk.bf16.gmra.mrb[12].mxu0 %vm278_vm0, %v1384_v18  ;;  %1339 = vmatmul.mubr.msk.bf16.gmra.mrb[12].mxu1 %vm278_vm0, %v1385_v19 }
  0x2b   :  { %1310 = vmatprep.mubr.msk.bf16.mxu0 %vm278_vm0, %v1386_v20  ;;  %1342 = vmatprep.mubr.msk.bf16.mxu1 %vm278_vm0, %v1387_v21 }
  0x32   :  { %1311 = vmatmul.mubr.msk.bf16.gmra.mrb[16].mxu0 %vm278_vm0, %v1388_v22  ;;  %1343 = vmatmul.mubr.msk.bf16.gmra.mrb[16].mxu1 %vm278_vm0, %v1389_v23 }
  0x33   :  { %1314 = vmatprep.mubr.msk.bf16.mxu0 %vm278_vm0, %v1390_v24  ;;  %1346 = vmatprep.mubr.msk.bf16.mxu1 %vm278_vm0, %v1391_v25 }
  0x3a   :  { %1315 = vmatmul.mubr.msk.bf16.gmra.mrb[20].mxu0 %vm278_vm0, %v1392_v26  ;;  %1347 = vmatmul.mubr.msk.bf16.gmra.mrb[20].mxu1 %vm278_vm0, %v1393_v27 }
  0x3b   :  { %1318 = vmatprep.mubr.msk.bf16.mxu0 %vm278_vm0, %v1394_v28  ;;  %1350 = vmatprep.mubr.msk.bf16.mxu1 %vm278_vm0, %v1395_v29 }
  0x42   :  { %1319 = vmatmul.mubr.msk.bf16.gmra.mrb[24].mxu0 %vm278_vm0, %v1396_v30  ;;  %1351 = vmatmul.mubr.msk.bf16.gmra.mrb[24].mxu1 %vm278_vm0, %v1397_v31 }
  0x43   :  { %1322 = vmatprep.mubr.msk.bf16.mxu0 %vm278_vm0, %v1398_v32  ;;  %1354 = vmatprep.mubr.msk.bf16.mxu1 %vm278_vm0, %v1399_v33 }
  0x4a   :  { %1323 = vmatmul.mubr.msk.bf16.gmra.mrb[28].mxu0 %vm278_vm0, %v1400_v34  ;;  %1355 = vmatmul.mubr.msk.bf16.gmra.mrb[28].mxu1 %vm278_vm0, %v1401_v35 }
  0xe5   :  { %v1296_v37 = vpop.f32.mrb[0].mxu0  ;;  %v1328_v38 = vpop.f32.mrb[0].mxu1 }
  0xe6   :  { %v418_v39 = vadd.f32 %v1296_v37, %v1565_v36  ;;  %v546_v40 = vadd.f32 %v1328_v38, %v1565_v36  ;;  %v409_v41 = vpop.f32.mrb[1].mxu0  ;;  %v537_v42 = vpop.f32.mrb[1].mxu1 }
  0xe7   :  { %v410_v43 = vadd.f32 %v1565_v36, %v409_v41  ;;  %v538_v44 = vadd.f32 %v1565_v36, %v537_v42  ;;  %v1297_v45 = vpop.f32.mrb[2].mxu0  ;;  %v1329_v46 = vpop.f32.mrb[2].mxu1 }
  0xe8   :  { %v666_v47 = vmax.f32 %v418_v39, 0.0  ;;  %v698_v48 = vmax.f32 %v546_v40, 0.0  ;;  %v421_v49 = vadd.f32 %v1297_v45, %v1565_v36  ;;  %v549_v50 = vadd.f32 %v1329_v46, %v1565_v36  ;;  %v412_v51 = vpop.f32.mrb[3].mxu0  ;;  %v540_v52 = vpop.f32.mrb[3].mxu1 }
  0xe9   :  { %v664_v53 = vmax.f32 %v410_v43, 0.0  ;;  %v696_v54 = vmax.f32 %v538_v44, 0.0  ;;  %v413_v55 = vadd.f32 %v1565_v36, %v412_v51  ;;  %v541_v56 = vadd.f32 %v1565_v36, %v540_v52 }
  0xea   :  { %v1188_v57 = vpack.c.bf16 %v666_v47, %v666_v47  ;;  %v1220_v58 = vpack.c.bf16 %v698_v48, %v698_v48  ;;  %v667_v59 = vmax.f32 %v421_v49, 0.0  ;;  %v699_v60 = vmax.f32 %v549_v50, 0.0 }
  0xeb   :  { %v1186_v61 = vpack.c.bf16 %v664_v53, %v664_v53  ;;  %v1218_v62 = vpack.c.bf16 %v696_v54, %v696_v54  ;;  %v665_v63 = vmax.f32 %v413_v55, 0.0  ;;  %v697_v0 = vmax.f32 %v541_v56, 0.0 }
  0xec   :  { %987 = vst.msk [vmem:[%s1890_s3 + $0x8] sm:$0xf] %vm984_vm1, %v1188_v57  ;;  %1019 = vst.msk [vmem:[%s1890_s3 + $0x88] sm:$0xf] %vm984_vm1, %v1220_v58  ;;  %v1189_v1 = vpack.c.bf16 %v667_v59, %v667_v59  ;;  %v1221_v2 = vpack.c.bf16 %v699_v60, %v699_v60 }
  0xed   :  { %985 = vst.msk [vmem:[%s1890_s3] sm:$0xf] %vm984_vm1, %v1186_v61  ;;  %1017 = vst.msk [vmem:[%s1890_s3 + $0x80] sm:$0xf] %vm984_vm1, %v1218_v62  ;;  %v1187_v3 = vpack.c.bf16 %v665_v63, %v665_v63  ;;  %v1219_v4 = vpack.c.bf16 %v697_v0, %v697_v0  ;;  %v1300_v5 = vpop.f32.mrb[4].mxu0  ;;  %v1332_v6 = vpop.f32.mrb[4].mxu1 }
  0xee   :  { %988 = vst.msk [vmem:[%s1890_s3 + $0xc] sm:$0xf] %vm984_vm1, %v1189_v1  ;;  %1020 = vst.msk [vmem:[%s1890_s3 + $0x8c] sm:$0xf] %vm984_vm1, %v1221_v2  ;;  %v434_v7 = vadd.f32 %v1300_v5, %v1565_v36  ;;  %v562_v8 = vadd.f32 %v1332_v6, %v1565_v36  ;;  %v425_v9 = vpop.f32.mrb[5].mxu0  ;;  %v553_v10 = vpop.f32.mrb[5].mxu1 }
  0xef   :  { %986 = vst.msk [vmem:[%s1890_s3 + $0x4] sm:$0xf] %vm984_vm1, %v1187_v3  ;;  %1018 = vst.msk [vmem:[%s1890_s3 + $0x84] sm:$0xf] %vm984_vm1, %v1219_v4  ;;  %v426_v11 = vadd.f32 %v1565_v36, %v425_v9  ;;  %v554_v12 = vadd.f32 %v1565_v36, %v553_v10  ;;  %v1301_v13 = vpop.f32.mrb[6].mxu0  ;;  %v1333_v14 = vpop.f32.mrb[6].mxu1 }
  0xf0   :  { %v670_v15 = vmax.f32 %v434_v7, 0.0  ;;  %v702_v16 = vmax.f32 %v562_v8, 0.0  ;;  %v437_v17 = vadd.f32 %v1301_v13, %v1565_v36  ;;  %v565_v18 = vadd.f32 %v1333_v14, %v1565_v36  ;;  %v428_v19 = vpop.f32.mrb[7].mxu0  ;;  %v556_v20 = vpop.f32.mrb[7].mxu1 }
  0xf1   :  { %v668_v21 = vmax.f32 %v426_v11, 0.0  ;;  %v700_v22 = vmax.f32 %v554_v12, 0.0  ;;  %v429_v23 = vadd.f32 %v1565_v36, %v428_v19  ;;  %v557_v24 = vadd.f32 %v1565_v36, %v556_v20 }
  0xf2   :  { %v1192_v25 = vpack.c.bf16 %v670_v15, %v670_v15  ;;  %v1224_v26 = vpack.c.bf16 %v702_v16, %v702_v16  ;;  %v671_v27 = vmax.f32 %v437_v17, 0.0  ;;  %v703_v28 = vmax.f32 %v565_v18, 0.0 }
  0xf3   :  { %v1190_v29 = vpack.c.bf16 %v668_v21, %v668_v21  ;;  %v1222_v30 = vpack.c.bf16 %v700_v22, %v700_v22  ;;  %v669_v31 = vmax.f32 %v429_v23, 0.0  ;;  %v701_v32 = vmax.f32 %v557_v24, 0.0 }
  0xf4   :  { %991 = vst.msk [vmem:[%s1890_s3 + $0x18] sm:$0xf] %vm984_vm1, %v1192_v25  ;;  %1023 = vst.msk [vmem:[%s1890_s3 + $0x98] sm:$0xf] %vm984_vm1, %v1224_v26  ;;  %v1193_v33 = vpack.c.bf16 %v671_v27, %v671_v27  ;;  %v1225_v34 = vpack.c.bf16 %v703_v28, %v703_v28 }
  0xf5   :  { %989 = vst.msk [vmem:[%s1890_s3 + $0x10] sm:$0xf] %vm984_vm1, %v1190_v29  ;;  %1021 = vst.msk [vmem:[%s1890_s3 + $0x90] sm:$0xf] %vm984_vm1, %v1222_v30  ;;  %v1191_v35 = vpack.c.bf16 %v669_v31, %v669_v31  ;;  %v1223_v37 = vpack.c.bf16 %v701_v32, %v701_v32  ;;  %v1304_v38 = vpop.f32.mrb[8].mxu0  ;;  %v1336_v39 = vpop.f32.mrb[8].mxu1 }
  0xf6   :  { %992 = vst.msk [vmem:[%s1890_s3 + $0x1c] sm:$0xf] %vm984_vm1, %v1193_v33  ;;  %1024 = vst.msk [vmem:[%s1890_s3 + $0x9c] sm:$0xf] %vm984_vm1, %v1225_v34  ;;  %v450_v40 = vadd.f32 %v1304_v38, %v1565_v36  ;;  %v578_v41 = vadd.f32 %v1336_v39, %v1565_v36  ;;  %v441_v42 = vpop.f32.mrb[9].mxu0  ;;  %v569_v43 = vpop.f32.mrb[9].mxu1 }
  0xf7   :  { %990 = vst.msk [vmem:[%s1890_s3 + $0x14] sm:$0xf] %vm984_vm1, %v1191_v35  ;;  %1022 = vst.msk [vmem:[%s1890_s3 + $0x94] sm:$0xf] %vm984_vm1, %v1223_v37  ;;  %v442_v44 = vadd.f32 %v1565_v36, %v441_v42  ;;  %v570_v45 = vadd.f32 %v1565_v36, %v569_v43  ;;  %v1305_v46 = vpop.f32.mrb[10].mxu0  ;;  %v1337_v47 = vpop.f32.mrb[10].mxu1 }
  0xf8   :  { %v674_v48 = vmax.f32 %v450_v40, 0.0  ;;  %v706_v49 = vmax.f32 %v578_v41, 0.0  ;;  %v453_v50 = vadd.f32 %v1305_v46, %v1565_v36  ;;  %v581_v51 = vadd.f32 %v1337_v47, %v1565_v36  ;;  %v444_v52 = vpop.f32.mrb[11].mxu0  ;;  %v572_v53 = vpop.f32.mrb[11].mxu1 }
  0xf9   :  { %v672_v54 = vmax.f32 %v442_v44, 0.0  ;;  %v704_v55 = vmax.f32 %v570_v45, 0.0  ;;  %v445_v56 = vadd.f32 %v1565_v36, %v444_v52  ;;  %v573_v57 = vadd.f32 %v1565_v36, %v572_v53 }
  0xfa   :  { %v1196_v58 = vpack.c.bf16 %v674_v48, %v674_v48  ;;  %v1228_v59 = vpack.c.bf16 %v706_v49, %v706_v49  ;;  %v675_v60 = vmax.f32 %v453_v50, 0.0  ;;  %v707_v61 = vmax.f32 %v581_v51, 0.0 }
  0xfb   :  { %v1194_v62 = vpack.c.bf16 %v672_v54, %v672_v54  ;;  %v1226_v63 = vpack.c.bf16 %v704_v55, %v704_v55  ;;  %v673_v0 = vmax.f32 %v445_v56, 0.0  ;;  %v705_v1 = vmax.f32 %v573_v57, 0.0 }
  0xfc   :  { %995 = vst.msk [vmem:[%s1890_s3 + $0x28] sm:$0xf] %vm984_vm1, %v1196_v58  ;;  %1027 = vst.msk [vmem:[%s1890_s3 + $0xa8] sm:$0xf] %vm984_vm1, %v1228_v59  ;;  %v1197_v2 = vpack.c.bf16 %v675_v60, %v675_v60  ;;  %v1229_v3 = vpack.c.bf16 %v707_v61, %v707_v61 }
  0xfd   :  { %993 = vst.msk [vmem:[%s1890_s3 + $0x20] sm:$0xf] %vm984_vm1, %v1194_v62  ;;  %1025 = vst.msk [vmem:[%s1890_s3 + $0xa0] sm:$0xf] %vm984_vm1, %v1226_v63  ;;  %v1195_v4 = vpack.c.bf16 %v673_v0, %v673_v0  ;;  %v1227_v5 = vpack.c.bf16 %v705_v1, %v705_v1  ;;  %v1308_v6 = vpop.f32.mrb[12].mxu0  ;;  %v1340_v7 = vpop.f32.mrb[12].mxu1 }
  0xfe   :  { %996 = vst.msk [vmem:[%s1890_s3 + $0x2c] sm:$0xf] %vm984_vm1, %v1197_v2  ;;  %1028 = vst.msk [vmem:[%s1890_s3 + $0xac] sm:$0xf] %vm984_vm1, %v1229_v3  ;;  %v466_v8 = vadd.f32 %v1308_v6, %v1565_v36  ;;  %v594_v9 = vadd.f32 %v1340_v7, %v1565_v36  ;;  %v457_v10 = vpop.f32.mrb[13].mxu0  ;;  %v585_v11 = vpop.f32.mrb[13].mxu1 }
  0xff   :  { %994 = vst.msk [vmem:[%s1890_s3 + $0x24] sm:$0xf] %vm984_vm1, %v1195_v4  ;;  %1026 = vst.msk [vmem:[%s1890_s3 + $0xa4] sm:$0xf] %vm984_vm1, %v1227_v5  ;;  %v458_v12 = vadd.f32 %v1565_v36, %v457_v10  ;;  %v586_v13 = vadd.f32 %v1565_v36, %v585_v11  ;;  %v1309_v14 = vpop.f32.mrb[14].mxu0  ;;  %v1341_v15 = vpop.f32.mrb[14].mxu1 }
 0x100   :  { %v678_v16 = vmax.f32 %v466_v8, 0.0  ;;  %v710_v17 = vmax.f32 %v594_v9, 0.0  ;;  %v469_v18 = vadd.f32 %v1309_v14, %v1565_v36  ;;  %v597_v19 = vadd.f32 %v1341_v15, %v1565_v36  ;;  %v460_v20 = vpop.f32.mrb[15].mxu0  ;;  %v588_v21 = vpop.f32.mrb[15].mxu1 }
 0x101   :  { %v676_v22 = vmax.f32 %v458_v12, 0.0  ;;  %v708_v23 = vmax.f32 %v586_v13, 0.0  ;;  %v461_v24 = vadd.f32 %v1565_v36, %v460_v20  ;;  %v589_v25 = vadd.f32 %v1565_v36, %v588_v21 }
 0x102   :  { %v1200_v26 = vpack.c.bf16 %v678_v16, %v678_v16  ;;  %v1232_v27 = vpack.c.bf16 %v710_v17, %v710_v17  ;;  %v679_v28 = vmax.f32 %v469_v18, 0.0  ;;  %v711_v29 = vmax.f32 %v597_v19, 0.0 }
 0x103   :  { %v1198_v30 = vpack.c.bf16 %v676_v22, %v676_v22  ;;  %v1230_v31 = vpack.c.bf16 %v708_v23, %v708_v23  ;;  %v677_v32 = vmax.f32 %v461_v24, 0.0  ;;  %v709_v33 = vmax.f32 %v589_v25, 0.0 }
 0x104   :  { %999 = vst.msk [vmem:[%s1890_s3 + $0x38] sm:$0xf] %vm984_vm1, %v1200_v26  ;;  %1031 = vst.msk [vmem:[%s1890_s3 + $0xb8] sm:$0xf] %vm984_vm1, %v1232_v27  ;;  %v1201_v34 = vpack.c.bf16 %v679_v28, %v679_v28  ;;  %v1233_v35 = vpack.c.bf16 %v711_v29, %v711_v29 }
 0x105   :  { %997 = vst.msk [vmem:[%s1890_s3 + $0x30] sm:$0xf] %vm984_vm1, %v1198_v30  ;;  %1029 = vst.msk [vmem:[%s1890_s3 + $0xb0] sm:$0xf] %vm984_vm1, %v1230_v31  ;;  %v1199_v37 = vpack.c.bf16 %v677_v32, %v677_v32  ;;  %v1231_v38 = vpack.c.bf16 %v709_v33, %v709_v33  ;;  %v1312_v39 = vpop.f32.mrb[16].mxu0  ;;  %v1344_v40 = vpop.f32.mrb[16].mxu1 }
 0x106   :  { %1000 = vst.msk [vmem:[%s1890_s3 + $0x3c] sm:$0xf] %vm984_vm1, %v1201_v34  ;;  %1032 = vst.msk [vmem:[%s1890_s3 + $0xbc] sm:$0xf] %vm984_vm1, %v1233_v35  ;;  %v482_v41 = vadd.f32 %v1312_v39, %v1565_v36  ;;  %v610_v42 = vadd.f32 %v1344_v40, %v1565_v36  ;;  %v473_v43 = vpop.f32.mrb[17].mxu0  ;;  %v601_v44 = vpop.f32.mrb[17].mxu1 }
 0x107   :  { %998 = vst.msk [vmem:[%s1890_s3 + $0x34] sm:$0xf] %vm984_vm1, %v1199_v37  ;;  %1030 = vst.msk [vmem:[%s1890_s3 + $0xb4] sm:$0xf] %vm984_vm1, %v1231_v38  ;;  %v474_v45 = vadd.f32 %v1565_v36, %v473_v43  ;;  %v602_v46 = vadd.f32 %v1565_v36, %v601_v44  ;;  %v1313_v47 = vpop.f32.mrb[18].mxu0  ;;  %v1345_v48 = vpop.f32.mrb[18].mxu1 }
 0x108   :  { %v682_v49 = vmax.f32 %v482_v41, 0.0  ;;  %v714_v50 = vmax.f32 %v610_v42, 0.0  ;;  %v485_v51 = vadd.f32 %v1313_v47, %v1565_v36  ;;  %v613_v52 = vadd.f32 %v1345_v48, %v1565_v36  ;;  %v476_v53 = vpop.f32.mrb[19].mxu0  ;;  %v604_v54 = vpop.f32.mrb[19].mxu1 }
 0x109   :  { %v680_v55 = vmax.f32 %v474_v45, 0.0  ;;  %v712_v56 = vmax.f32 %v602_v46, 0.0  ;;  %v477_v57 = vadd.f32 %v1565_v36, %v476_v53  ;;  %v605_v58 = vadd.f32 %v1565_v36, %v604_v54 }
 0x10a   :  { %v1204_v59 = vpack.c.bf16 %v682_v49, %v682_v49  ;;  %v1236_v60 = vpack.c.bf16 %v714_v50, %v714_v50  ;;  %v683_v61 = vmax.f32 %v485_v51, 0.0  ;;  %v715_v62 = vmax.f32 %v613_v52, 0.0 }
 0x10b   :  { %v1202_v63 = vpack.c.bf16 %v680_v55, %v680_v55  ;;  %v1234_v0 = vpack.c.bf16 %v712_v56, %v712_v56  ;;  %v681_v1 = vmax.f32 %v477_v57, 0.0  ;;  %v713_v2 = vmax.f32 %v605_v58, 0.0 }
 0x10c   :  { %1003 = vst.msk [vmem:[%s1890_s3 + $0x48] sm:$0xf] %vm984_vm1, %v1204_v59  ;;  %1035 = vst.msk [vmem:[%s1890_s3 + $0xc8] sm:$0xf] %vm984_vm1, %v1236_v60  ;;  %v1205_v3 = vpack.c.bf16 %v683_v61, %v683_v61  ;;  %v1237_v4 = vpack.c.bf16 %v715_v62, %v715_v62 }
 0x10d   :  { %1001 = vst.msk [vmem:[%s1890_s3 + $0x40] sm:$0xf] %vm984_vm1, %v1202_v63  ;;  %1033 = vst.msk [vmem:[%s1890_s3 + $0xc0] sm:$0xf] %vm984_vm1, %v1234_v0  ;;  %v1203_v5 = vpack.c.bf16 %v681_v1, %v681_v1  ;;  %v1235_v6 = vpack.c.bf16 %v713_v2, %v713_v2  ;;  %v1316_v7 = vpop.f32.mrb[20].mxu0  ;;  %v1348_v8 = vpop.f32.mrb[20].mxu1 }
 0x10e   :  { %1004 = vst.msk [vmem:[%s1890_s3 + $0x4c] sm:$0xf] %vm984_vm1, %v1205_v3  ;;  %1036 = vst.msk [vmem:[%s1890_s3 + $0xcc] sm:$0xf] %vm984_vm1, %v1237_v4  ;;  %v498_v9 = vadd.f32 %v1316_v7, %v1565_v36  ;;  %v626_v10 = vadd.f32 %v1348_v8, %v1565_v36  ;;  %v489_v11 = vpop.f32.mrb[21].mxu0  ;;  %v617_v12 = vpop.f32.mrb[21].mxu1 }
 0x10f   :  { %1002 = vst.msk [vmem:[%s1890_s3 + $0x44] sm:$0xf] %vm984_vm1, %v1203_v5  ;;  %1034 = vst.msk [vmem:[%s1890_s3 + $0xc4] sm:$0xf] %vm984_vm1, %v1235_v6  ;;  %v490_v13 = vadd.f32 %v1565_v36, %v489_v11  ;;  %v618_v14 = vadd.f32 %v1565_v36, %v617_v12  ;;  %v1317_v15 = vpop.f32.mrb[22].mxu0  ;;  %v1349_v16 = vpop.f32.mrb[22].mxu1 }
 0x110   :  { %v686_v17 = vmax.f32 %v498_v9, 0.0  ;;  %v718_v18 = vmax.f32 %v626_v10, 0.0  ;;  %v501_v19 = vadd.f32 %v1317_v15, %v1565_v36  ;;  %v629_v20 = vadd.f32 %v1349_v16, %v1565_v36  ;;  %v492_v21 = vpop.f32.mrb[23].mxu0  ;;  %v620_v22 = vpop.f32.mrb[23].mxu1 }
 0x111   :  { %v684_v23 = vmax.f32 %v490_v13, 0.0  ;;  %v716_v24 = vmax.f32 %v618_v14, 0.0  ;;  %v493_v25 = vadd.f32 %v1565_v36, %v492_v21  ;;  %v621_v26 = vadd.f32 %v1565_v36, %v620_v22 }
 0x112   :  { %v1208_v27 = vpack.c.bf16 %v686_v17, %v686_v17  ;;  %v1240_v28 = vpack.c.bf16 %v718_v18, %v718_v18  ;;  %v687_v29 = vmax.f32 %v501_v19, 0.0  ;;  %v719_v30 = vmax.f32 %v629_v20, 0.0 }
 0x113   :  { %v1206_v31 = vpack.c.bf16 %v684_v23, %v684_v23  ;;  %v1238_v32 = vpack.c.bf16 %v716_v24, %v716_v24  ;;  %v685_v33 = vmax.f32 %v493_v25, 0.0  ;;  %v717_v34 = vmax.f32 %v621_v26, 0.0 }
 0x114   :  { %1007 = vst.msk [vmem:[%s1890_s3 + $0x58] sm:$0xf] %vm984_vm1, %v1208_v27  ;;  %1039 = vst.msk [vmem:[%s1890_s3 + $0xd8] sm:$0xf] %vm984_vm1, %v1240_v28  ;;  %v1209_v35 = vpack.c.bf16 %v687_v29, %v687_v29  ;;  %v1241_v37 = vpack.c.bf16 %v719_v30, %v719_v30 }
 0x115   :  { %1005 = vst.msk [vmem:[%s1890_s3 + $0x50] sm:$0xf] %vm984_vm1, %v1206_v31  ;;  %1037 = vst.msk [vmem:[%s1890_s3 + $0xd0] sm:$0xf] %vm984_vm1, %v1238_v32  ;;  %v1207_v38 = vpack.c.bf16 %v685_v33, %v685_v33  ;;  %v1239_v39 = vpack.c.bf16 %v717_v34, %v717_v34  ;;  %v1320_v40 = vpop.f32.mrb[24].mxu0  ;;  %v1352_v41 = vpop.f32.mrb[24].mxu1 }
 0x116   :  { %1008 = vst.msk [vmem:[%s1890_s3 + $0x5c] sm:$0xf] %vm984_vm1, %v1209_v35  ;;  %1040 = vst.msk [vmem:[%s1890_s3 + $0xdc] sm:$0xf] %vm984_vm1, %v1241_v37  ;;  %v514_v42 = vadd.f32 %v1320_v40, %v1565_v36  ;;  %v642_v43 = vadd.f32 %v1352_v41, %v1565_v36  ;;  %v505_v44 = vpop.f32.mrb[25].mxu0  ;;  %v633_v45 = vpop.f32.mrb[25].mxu1 }
 0x117   :  { %1006 = vst.msk [vmem:[%s1890_s3 + $0x54] sm:$0xf] %vm984_vm1, %v1207_v38  ;;  %1038 = vst.msk [vmem:[%s1890_s3 + $0xd4] sm:$0xf] %vm984_vm1, %v1239_v39  ;;  %v506_v46 = vadd.f32 %v1565_v36, %v505_v44  ;;  %v634_v47 = vadd.f32 %v1565_v36, %v633_v45  ;;  %v1321_v48 = vpop.f32.mrb[26].mxu0  ;;  %v1353_v49 = vpop.f32.mrb[26].mxu1 }
 0x118   :  { %v690_v50 = vmax.f32 %v514_v42, 0.0  ;;  %v722_v51 = vmax.f32 %v642_v43, 0.0  ;;  %v517_v52 = vadd.f32 %v1321_v48, %v1565_v36  ;;  %v645_v53 = vadd.f32 %v1353_v49, %v1565_v36  ;;  %v508_v54 = vpop.f32.mrb[27].mxu0  ;;  %v636_v55 = vpop.f32.mrb[27].mxu1 }
 0x119   :  { %v688_v56 = vmax.f32 %v506_v46, 0.0  ;;  %v720_v57 = vmax.f32 %v634_v47, 0.0  ;;  %v509_v58 = vadd.f32 %v1565_v36, %v508_v54  ;;  %v637_v59 = vadd.f32 %v1565_v36, %v636_v55 }
 0x11a   :  { %v1212_v60 = vpack.c.bf16 %v690_v50, %v690_v50  ;;  %v1244_v61 = vpack.c.bf16 %v722_v51, %v722_v51  ;;  %v691_v62 = vmax.f32 %v517_v52, 0.0  ;;  %v723_v63 = vmax.f32 %v645_v53, 0.0 }
 0x11b   :  { %v1210_v0 = vpack.c.bf16 %v688_v56, %v688_v56  ;;  %v1242_v1 = vpack.c.bf16 %v720_v57, %v720_v57  ;;  %v689_v2 = vmax.f32 %v509_v58, 0.0  ;;  %v721_v3 = vmax.f32 %v637_v59, 0.0 }
 0x11c   :  { %1011 = vst.msk [vmem:[%s1890_s3 + $0x68] sm:$0xf] %vm984_vm1, %v1212_v60  ;;  %1043 = vst.msk [vmem:[%s1890_s3 + $0xe8] sm:$0xf] %vm984_vm1, %v1244_v61  ;;  %v1213_v4 = vpack.c.bf16 %v691_v62, %v691_v62  ;;  %v1245_v5 = vpack.c.bf16 %v723_v63, %v723_v63 }
 0x11d   :  { %1009 = vst.msk [vmem:[%s1890_s3 + $0x60] sm:$0xf] %vm984_vm1, %v1210_v0  ;;  %1041 = vst.msk [vmem:[%s1890_s3 + $0xe0] sm:$0xf] %vm984_vm1, %v1242_v1  ;;  %v1211_v6 = vpack.c.bf16 %v689_v2, %v689_v2  ;;  %v1243_v7 = vpack.c.bf16 %v721_v3, %v721_v3  ;;  %v1324_v8 = vpop.f32.mrb[28].mxu0  ;;  %v1356_v9 = vpop.f32.mrb[28].mxu1 }
 0x11e   :  { %1012 = vst.msk [vmem:[%s1890_s3 + $0x6c] sm:$0xf] %vm984_vm1, %v1213_v4  ;;  %1044 = vst.msk [vmem:[%s1890_s3 + $0xec] sm:$0xf] %vm984_vm1, %v1245_v5  ;;  %v530_v10 = vadd.f32 %v1324_v8, %v1565_v36  ;;  %v658_v11 = vadd.f32 %v1356_v9, %v1565_v36  ;;  %v521_v12 = vpop.f32.mrb[29].mxu0  ;;  %v649_v13 = vpop.f32.mrb[29].mxu1 }
 0x11f   :  { %1010 = vst.msk [vmem:[%s1890_s3 + $0x64] sm:$0xf] %vm984_vm1, %v1211_v6  ;;  %1042 = vst.msk [vmem:[%s1890_s3 + $0xe4] sm:$0xf] %vm984_vm1, %v1243_v7  ;;  %v522_v14 = vadd.f32 %v1565_v36, %v521_v12  ;;  %v650_v15 = vadd.f32 %v1565_v36, %v649_v13  ;;  %v1325_v16 = vpop.f32.mrb[30].mxu0  ;;  %v1357_v17 = vpop.f32.mrb[30].mxu1 }
 0x120   :  { %v694_v18 = vmax.f32 %v530_v10, 0.0  ;;  %v726_v19 = vmax.f32 %v658_v11, 0.0  ;;  %v533_v20 = vadd.f32 %v1325_v16, %v1565_v36  ;;  %v661_v21 = vadd.f32 %v1357_v17, %v1565_v36  ;;  %v524_v22 = vpop.f32.mrb[31].mxu0  ;;  %v652_v23 = vpop.f32.mrb[31].mxu1 }
 0x121   :  { %v692_v24 = vmax.f32 %v522_v14, 0.0  ;;  %v724_v25 = vmax.f32 %v650_v15, 0.0  ;;  %v525_v26 = vadd.f32 %v1565_v36, %v524_v22  ;;  %v653_v27 = vadd.f32 %v1565_v36, %v652_v23 }
 0x122   :  { %v1216_v28 = vpack.c.bf16 %v694_v18, %v694_v18  ;;  %v1248_v29 = vpack.c.bf16 %v726_v19, %v726_v19  ;;  %v695_v30 = vmax.f32 %v533_v20, 0.0  ;;  %v727_v31 = vmax.f32 %v661_v21, 0.0 }
 0x123   :  { %v1214_v32 = vpack.c.bf16 %v692_v24, %v692_v24  ;;  %v1246_v33 = vpack.c.bf16 %v724_v25, %v724_v25  ;;  %v693_v34 = vmax.f32 %v525_v26, 0.0  ;;  %v725_v35 = vmax.f32 %v653_v27, 0.0 }
 0x124   :  { %1015 = vst.msk [vmem:[%s1890_s3 + $0x78] sm:$0xf] %vm984_vm1, %v1216_v28  ;;  %1047 = vst.msk [vmem:[%s1890_s3 + $0xf8] sm:$0xf] %vm984_vm1, %v1248_v29  ;;  %v1217_v37 = vpack.c.bf16 %v695_v30, %v695_v30  ;;  %v1249_v36 = vpack.c.bf16 %v727_v31, %v727_v31 }
 0x125   :  { %1013 = vst.msk [vmem:[%s1890_s3 + $0x70] sm:$0xf] %vm984_vm1, %v1214_v32  ;;  %1045 = vst.msk [vmem:[%s1890_s3 + $0xf0] sm:$0xf] %vm984_vm1, %v1246_v33  ;;  %v1215_v38 = vpack.c.bf16 %v693_v34, %v693_v34  ;;  %v1247_v39 = vpack.c.bf16 %v725_v35, %v725_v35 }
 0x126   :  { %1016 = vst.msk [vmem:[%s1890_s3 + $0x7c] sm:$0xf] %vm984_vm1, %v1217_v37  ;;  %1048 = vst.msk [vmem:[%s1890_s3 + $0xfc] sm:$0xf] %vm984_vm1, %v1249_v36 }
 0x127   :  { %1014 = vst.msk [vmem:[%s1890_s3 + $0x74] sm:$0xf] %vm984_vm1, %v1215_v38  ;;  %1046 = vst.msk [vmem:[%s1890_s3 + $0xf4] sm:$0xf] %vm984_vm1, %v1247_v39 }

</bundles_post_ra>
